<compile_context>
chip_gen: v7x
topology: tpu7x:2x2x1
jax: 0.10.0
libtpu: 0.0.40
codegen_flags: <defaults>
</compile_context>

<pallas_src>
import functools

import jax
import jax.numpy as jnp
from jax.experimental import pallas as pl
from jax.experimental.pallas import tpu as pltpu


def _fused_unetconv2_kernel(x_ref, b1_ref, s1_ref, t1_ref,
                            b2_ref, s2_ref, t2_ref,
                            o_ref, apad1_ref, apad2_ref):
    """Fused conv1(3x3)+BN+ReLU -> conv2(3x3)+BN+ReLU for one batch element.

    x_ref:         (1, H, W*Cin)            lane-flattened NHWC input rows
    b{1,2}_ref:    (KH, W*Cin_l, W*Cout_l)  block-banded weights (dx taps + width pad folded)
    s/t{1,2}_ref:  (1, W*Cout_l)            BN scale / shift tiled across W
    o_ref:         (1, H, W*C2)
    apad{1,2}_ref: VMEM (H+2, W*Cin_l)      height-padded activation scratch
    """
    H = o_ref.shape[1]

    def band_conv_bn_relu(apad_ref, b_ref, s_ref, t_ref):
        kh, _, n = b_ref.shape
        acc = jnp.zeros((H, n), dtype=jnp.float32)
        for dy in range(kh):          # static unroll: kh lane-dense MXU matmuls
            lhs = apad_ref[dy:dy + H, :].astype(b_ref.dtype)
            acc += jnp.dot(lhs, b_ref[dy], preferred_element_type=jnp.float32)
        return jnp.maximum(acc * s_ref[...] + t_ref[...], 0.0)   # f32

    # ---- block 1: height-pad in VMEM, 3 band matmuls, BN + ReLU ----
    apad1_ref[...] = jnp.zeros_like(apad1_ref)      # zero height halo rows
    apad1_ref[1:H + 1, :] = x_ref[0]
    h1 = band_conv_bn_relu(apad1_ref, b1_ref, s1_ref, t1_ref)    # (H, W*C1)

    # ---- block 2: intermediate stays in VMEM (no HBM round trip) ----
    apad2_ref[...] = jnp.zeros_like(apad2_ref)
    apad2_ref[1:H + 1, :] = h1
    h2 = band_conv_bn_relu(apad2_ref, b2_ref, s2_ref, t2_ref)    # (H, W*C2)

    o_ref[0] = h2.astype(o_ref.dtype)


def _make_band_weights(w_hwio, W):
    """Fold the KW width taps and the width zero-padding into the contraction dim.

    w_hwio: (KH, KW, Cin, Cout)  ->  band: (KH, W*Cin, W*Cout) with
      band[dy, iw*Cin+ci, ow*Cout+co] = w[dy, iw-ow+pad, ci, co]   (0 if tap OOB)
    so that   out_rows = sum_dy  apad_rows[dy:dy+H, :] @ band[dy].
    """
    KH, KW, Cin, Cout = w_hwio.shape
    pad = (KW - 1) // 2
    iw = jnp.arange(W)[:, None]
    ow = jnp.arange(W)[None, :]
    dx = iw - ow + pad                                      # (W, W)
    valid = (dx >= 0) & (dx < KW)
    taps = w_hwio[:, jnp.clip(dx, 0, KW - 1)]               # (KH, W_iw, W_ow, Cin, Cout)
    taps = jnp.where(valid[None, :, :, None, None], taps, 0.0)
    band = jnp.transpose(taps, (0, 1, 3, 2, 4))             # (KH, iw, Cin, ow, Cout)
    return band.reshape(KH, W * Cin, W * Cout)


@functools.partial(jax.jit, static_argnames=("compute_dtype",))
def unet_conv2_forward(x_nchw, params_list, compute_dtype=jnp.float32):
    """Forward pass of unetConv2 (n=2): (N, Cin, H, W) -> (N, Cout, H, W)."""
    N, Cin, H, W = x_nchw.shape
    p1, p2 = params_list
    KH, _, _, C1 = p1["w"].shape
    C2 = p2["w"].shape[3]

    # NCHW -> lane-flattened NHWC rows (channels innermost on the lane axis).
    x_rows = jnp.transpose(x_nchw, (0, 2, 3, 1)).reshape(N, H, W * Cin)

    b1 = _make_band_weights(p1["w"], W).astype(compute_dtype)
    b2 = _make_band_weights(p2["w"], W).astype(compute_dtype)
    s1 = jnp.tile(p1["scale"], W).reshape(1, W * C1).astype(jnp.float32)
    t1 = jnp.tile(p1["shift"], W).reshape(1, W * C1).astype(jnp.float32)
    s2 = jnp.tile(p2["scale"], W).reshape(1, W * C2).astype(jnp.float32)
    t2 = jnp.tile(p2["shift"], W).reshape(1, W * C2).astype(jnp.float32)

    out_rows = pl.pallas_call(
        _fused_unetconv2_kernel,
        out_shape=jax.ShapeDtypeStruct((N, H, W * C2), jnp.float32),
        grid_spec=pltpu.PrefetchScalarGridSpec(
            num_scalar_prefetch=0,
            grid=(N,),
            in_specs=[
                pl.BlockSpec((1, H, W * Cin), lambda n: (n, 0, 0)),
                pl.BlockSpec((KH, W * Cin, W * C1), lambda n: (0, 0, 0)),
                pl.BlockSpec((1, W * C1), lambda n: (0, 0)),
                pl.BlockSpec((1, W * C1), lambda n: (0, 0)),
                pl.BlockSpec((KH, W * C1, W * C2), lambda n: (0, 0, 0)),
                pl.BlockSpec((1, W * C2), lambda n: (0, 0)),
                pl.BlockSpec((1, W * C2), lambda n: (0, 0)),
            ],
            out_specs=pl.BlockSpec((1, H, W * C2), lambda n: (n, 0, 0)),
            scratch_shapes=[
                pltpu.VMEM((H + 2, W * Cin), jnp.float32),   # padded conv1 input
                pltpu.VMEM((H + 2, W * C1), jnp.float32),    # padded conv2 input (fused)
            ],
        ),
        compiler_params=pltpu.CompilerParams(
            dimension_semantics=("parallel",)),
    )(x_rows, b1, s1, t1, b2, s2, t2)

    out = out_rows.reshape(N, H, W, C2)
    return jnp.transpose(out, (0, 3, 1, 2))    # back to NCHW


def make_block_params(key, cin, cout, ks=3):
    """Deterministic synthetic Conv2d + BatchNorm2d (eval) parameters (HWIO weights)."""
    kw_, kb, kg, kbe, km, kv = jax.random.split(key, 6)
    w = 0.1 * jax.random.normal(kw_, (ks, ks, cin, cout), dtype=jnp.float32)
    b = 0.1 * jax.random.normal(kb, (cout,), dtype=jnp.float32)
    gamma = 1.0 + 0.1 * jax.random.normal(kg, (cout,), dtype=jnp.float32)
    beta = 0.1 * jax.random.normal(kbe, (cout,), dtype=jnp.float32)
    running_mean = 0.1 * jax.random.normal(km, (cout,), dtype=jnp.float32)
    running_var = 1.0 + 0.1 * jax.random.uniform(kv, (cout,), dtype=jnp.float32)
    eps = 1e-5
    bn_scale = gamma / jnp.sqrt(running_var + eps)
    # conv output z; BN(z + b) = (z + b - mean) * bn_scale + beta
    shift = (b - running_mean) * bn_scale + beta
    return dict(w=w, scale=bn_scale, shift=shift,
                b=b, gamma=gamma, beta=beta,
                mean=running_mean, var=running_var, eps=eps)


def _reference_forward(x_nchw, params_list):
    """Pure-JAX (XLA) reference for correctness checking."""
    x = x_nchw
    for p in params_list:
        y = jax.lax.conv_general_dilated(
            x, p["w"], window_strides=(1, 1), padding="SAME",
            dimension_numbers=("NCHW", "HWIO", "NCHW"))
        z = y + p["b"][None, :, None, None]
        z = (z - p["mean"][None, :, None, None]) / jnp.sqrt(
            p["var"][None, :, None, None] + p["eps"])
        z = z * p["gamma"][None, :, None, None] + p["beta"][None, :, None, None]
        x = jnp.maximum(z, 0.0)
    return x


if __name__ == "__main__":
    key = jax.random.PRNGKey(0)
    k_x, k_b1, k_b2 = jax.random.split(key, 3)

    N, Cin, H, W = 2, 4, 16, 16
    Cout = 8

    x = jax.random.normal(k_x, (N, Cin, H, W), dtype=jnp.float32)

    params = [
        make_block_params(k_b1, Cin, Cout),    # conv1: in_size -> out_size
        make_block_params(k_b2, Cout, Cout),   # conv2: out_size -> out_size
    ]

    # f32 path (exact semantics) vs XLA reference.
    out = jax.block_until_ready(unet_conv2_forward(x, params))
    ref = jax.block_until_ready(_reference_forward(x, params))
    assert out.shape == (N, Cout, H, W)
    assert jnp.allclose(out, ref, atol=1e-4, rtol=1e-4), "f32 mismatch vs XLA reference"

    # bf16 MXU path (v6e/v7x native matmul dtype); accumulation/BN/ReLU in f32.
    out_bf16 = jax.block_until_ready(
        unet_conv2_forward(x, params, compute_dtype=jnp.bfloat16))
    assert jnp.allclose(out_bf16, ref, atol=5e-2, rtol=5e-2), "bf16 mismatch vs reference"

    print("KERNEL_OK")
</pallas_src>

<mosaic_0001>
module attributes {stable_mosaic.version = 11 : i64} {
  func.func @_fused_unetconv2_kernel(%arg0: i32, %arg1: memref<1x16x64xf32, #tpu.memory_space<vmem>>, %arg2: memref<3x64x128xf32, #tpu.memory_space<vmem>>, %arg3: memref<1x128xf32, #tpu.memory_space<vmem>>, %arg4: memref<1x128xf32, #tpu.memory_space<vmem>>, %arg5: memref<3x128x128xf32, #tpu.memory_space<vmem>>, %arg6: memref<1x128xf32, #tpu.memory_space<vmem>>, %arg7: memref<1x128xf32, #tpu.memory_space<vmem>>, %arg8: memref<1x16x128xf32, #tpu.memory_space<vmem>>, %arg9: memref<18x64xf32, #tpu.memory_space<vmem>>, %arg10: memref<18x128xf32, #tpu.memory_space<vmem>>) attributes {dimension_semantics = [#tpu.dimension_semantics<parallel>], iteration_bounds = array<i64: 2>, scalar_prefetch = 0 : i64, scratch_operands = 2 : i64, tpu.core_type = #tpu.core_type<tc>, window_params = [{transform_indices = @transform_0, window_bounds = array<i64: 1, 16, 64>}, {pipeline_mode = #tpu.pipeline_mode<synchronous>, transform_indices = @transform_1, window_bounds = array<i64: 3, 64, 128>}, {pipeline_mode = #tpu.pipeline_mode<synchronous>, transform_indices = @transform_2, window_bounds = array<i64: 1, 128>}, {pipeline_mode = #tpu.pipeline_mode<synchronous>, transform_indices = @transform_3, window_bounds = array<i64: 1, 128>}, {pipeline_mode = #tpu.pipeline_mode<synchronous>, transform_indices = @transform_4, window_bounds = array<i64: 3, 128, 128>}, {pipeline_mode = #tpu.pipeline_mode<synchronous>, transform_indices = @transform_5, window_bounds = array<i64: 1, 128>}, {pipeline_mode = #tpu.pipeline_mode<synchronous>, transform_indices = @transform_6, window_bounds = array<i64: 1, 128>}, {transform_indices = @transform_7, window_bounds = array<i64: 1, 16, 128>}]} {
    %cst = arith.constant 0.000000e+00 : f32
    %0 = vector.broadcast %cst : f32 to vector<18x64xf32>
    %c0 = arith.constant 0 : index
    %c0_0 = arith.constant 0 : index
    %1 = vector.load %arg9[%c0, %c0_0] : memref<18x64xf32, #tpu.memory_space<vmem>>, vector<18x64xf32>
    tpu.vector_store %arg9[%c0, %c0_0], %0 {strides = array<i32>} : memref<18x64xf32, #tpu.memory_space<vmem>>, vector<18x64xf32>,
    %c0_1 = arith.constant 0 : index
    %c0_2 = arith.constant 0 : index
    %c0_3 = arith.constant 0 : index
    %2 = vector.load %arg1[%c0_1, %c0_2, %c0_3] : memref<1x16x64xf32, #tpu.memory_space<vmem>>, vector<1x16x64xf32>
    %3 = vector.shape_cast %2 : vector<1x16x64xf32> to vector<16x64xf32>
    %c1 = arith.constant 1 : index
    %c0_4 = arith.constant 0 : index
    %4 = vector.load %arg9[%c1, %c0_4] : memref<18x64xf32, #tpu.memory_space<vmem>>, vector<16x64xf32>
    tpu.vector_store %arg9[%c1, %c0_4], %3 {strides = array<i32>} : memref<18x64xf32, #tpu.memory_space<vmem>>, vector<16x64xf32>,
    %cst_5 = arith.constant 0.000000e+00 : f32
    %5 = vector.broadcast %cst_5 : f32 to vector<16x128xf32>
    %c0_6 = arith.constant 0 : index
    %c0_7 = arith.constant 0 : index
    %6 = vector.load %arg9[%c0_6, %c0_7] : memref<18x64xf32, #tpu.memory_space<vmem>>, vector<16x64xf32>
    %c0_8 = arith.constant 0 : index
    %c0_9 = arith.constant 0 : index
    %c0_10 = arith.constant 0 : index
    %7 = vector.load %arg2[%c0_8, %c0_9, %c0_10] : memref<3x64x128xf32, #tpu.memory_space<vmem>>, vector<1x64x128xf32>
    %8 = vector.shape_cast %7 : vector<1x64x128xf32> to vector<64x128xf32>
    %cst_11 = arith.constant dense<0.000000e+00> : vector<16x128xf32>
    %9 = tpu.matmul %6, %8, %cst_11 {dimension_numbers = #tpu.dot_dimension_numbers<[1], [0], [0], [1], [0, 0, 1, 1], [], []>} : vector<16x64xf32>, vector<64x128xf32>, vector<16x128xf32> -> vector<16x128xf32>
    %10 = arith.addf %5, %9 : vector<16x128xf32>
    %c1_12 = arith.constant 1 : index
    %c0_13 = arith.constant 0 : index
    %11 = vector.load %arg9[%c1_12, %c0_13] : memref<18x64xf32, #tpu.memory_space<vmem>>, vector<16x64xf32>
    %c1_14 = arith.constant 1 : index
    %c0_15 = arith.constant 0 : index
    %c0_16 = arith.constant 0 : index
    %12 = vector.load %arg2[%c1_14, %c0_15, %c0_16] : memref<3x64x128xf32, #tpu.memory_space<vmem>>, vector<1x64x128xf32>
    %13 = vector.shape_cast %12 : vector<1x64x128xf32> to vector<64x128xf32>
    %cst_17 = arith.constant dense<0.000000e+00> : vector<16x128xf32>
    %14 = tpu.matmul %11, %13, %cst_17 {dimension_numbers = #tpu.dot_dimension_numbers<[1], [0], [0], [1], [0, 0, 1, 1], [], []>} : vector<16x64xf32>, vector<64x128xf32>, vector<16x128xf32> -> vector<16x128xf32>
    %15 = arith.addf %10, %14 : vector<16x128xf32>
    %c2 = arith.constant 2 : index
    %c0_18 = arith.constant 0 : index
    %16 = vector.load %arg9[%c2, %c0_18] : memref<18x64xf32, #tpu.memory_space<vmem>>, vector<16x64xf32>
    %c2_19 = arith.constant 2 : index
    %c0_20 = arith.constant 0 : index
    %c0_21 = arith.constant 0 : index
    %17 = vector.load %arg2[%c2_19, %c0_20, %c0_21] : memref<3x64x128xf32, #tpu.memory_space<vmem>>, vector<1x64x128xf32>
    %18 = vector.shape_cast %17 : vector<1x64x128xf32> to vector<64x128xf32>
    %cst_22 = arith.constant dense<0.000000e+00> : vector<16x128xf32>
    %19 = tpu.matmul %16, %18, %cst_22 {dimension_numbers = #tpu.dot_dimension_numbers<[1], [0], [0], [1], [0, 0, 1, 1], [], []>} : vector<16x64xf32>, vector<64x128xf32>, vector<16x128xf32> -> vector<16x128xf32>
    %20 = arith.addf %15, %19 : vector<16x128xf32>
    %c0_23 = arith.constant 0 : index
    %c0_24 = arith.constant 0 : index
    %21 = vector.load %arg3[%c0_23, %c0_24] : memref<1x128xf32, #tpu.memory_space<vmem>>, vector<1x128xf32>
    %22 = vector.broadcast %21 : vector<1x128xf32> to vector<16x128xf32>
    %23 = arith.mulf %20, %22 : vector<16x128xf32>
    %c0_25 = arith.constant 0 : index
    %c0_26 = arith.constant 0 : index
    %24 = vector.load %arg4[%c0_25, %c0_26] : memref<1x128xf32, #tpu.memory_space<vmem>>, vector<1x128xf32>
    %25 = vector.broadcast %24 : vector<1x128xf32> to vector<16x128xf32>
    %26 = arith.addf %23, %25 : vector<16x128xf32>
    %cst_27 = arith.constant 0.000000e+00 : f32
    %27 = vector.broadcast %cst_27 : f32 to vector<16x128xf32>
    %28 = arith.maximumf %26, %27 : vector<16x128xf32>
    %cst_28 = arith.constant 0.000000e+00 : f32
    %29 = vector.broadcast %cst_28 : f32 to vector<18x128xf32>
    %c0_29 = arith.constant 0 : index
    %c0_30 = arith.constant 0 : index
    %30 = vector.load %arg10[%c0_29, %c0_30] : memref<18x128xf32, #tpu.memory_space<vmem>>, vector<18x128xf32>
    tpu.vector_store %arg10[%c0_29, %c0_30], %29 {strides = array<i32>} : memref<18x128xf32, #tpu.memory_space<vmem>>, vector<18x128xf32>,
    %c1_31 = arith.constant 1 : index
    %c0_32 = arith.constant 0 : index
    %31 = vector.load %arg10[%c1_31, %c0_32] : memref<18x128xf32, #tpu.memory_space<vmem>>, vector<16x128xf32>
    tpu.vector_store %arg10[%c1_31, %c0_32], %28 {strides = array<i32>} : memref<18x128xf32, #tpu.memory_space<vmem>>, vector<16x128xf32>,
    %cst_33 = arith.constant 0.000000e+00 : f32
    %32 = vector.broadcast %cst_33 : f32 to vector<16x128xf32>
    %c0_34 = arith.constant 0 : index
    %c0_35 = arith.constant 0 : index
    %33 = vector.load %arg10[%c0_34, %c0_35] : memref<18x128xf32, #tpu.memory_space<vmem>>, vector<16x128xf32>
    %c0_36 = arith.constant 0 : index
    %c0_37 = arith.constant 0 : index
    %c0_38 = arith.constant 0 : index
    %34 = vector.load %arg5[%c0_36, %c0_37, %c0_38] : memref<3x128x128xf32, #tpu.memory_space<vmem>>, vector<1x128x128xf32>
    %35 = vector.shape_cast %34 : vector<1x128x128xf32> to vector<128x128xf32>
    %cst_39 = arith.constant dense<0.000000e+00> : vector<16x128xf32>
    %36 = tpu.matmul %33, %35, %cst_39 {dimension_numbers = #tpu.dot_dimension_numbers<[1], [0], [0], [1], [0, 0, 1, 1], [], []>} : vector<16x128xf32>, vector<128x128xf32>, vector<16x128xf32> -> vector<16x128xf32>
    %37 = arith.addf %32, %36 : vector<16x128xf32>
    %c1_40 = arith.constant 1 : index
    %c0_41 = arith.constant 0 : index
    %38 = vector.load %arg10[%c1_40, %c0_41] : memref<18x128xf32, #tpu.memory_space<vmem>>, vector<16x128xf32>
    %c1_42 = arith.constant 1 : index
    %c0_43 = arith.constant 0 : index
    %c0_44 = arith.constant 0 : index
    %39 = vector.load %arg5[%c1_42, %c0_43, %c0_44] : memref<3x128x128xf32, #tpu.memory_space<vmem>>, vector<1x128x128xf32>
    %40 = vector.shape_cast %39 : vector<1x128x128xf32> to vector<128x128xf32>
    %cst_45 = arith.constant dense<0.000000e+00> : vector<16x128xf32>
    %41 = tpu.matmul %38, %40, %cst_45 {dimension_numbers = #tpu.dot_dimension_numbers<[1], [0], [0], [1], [0, 0, 1, 1], [], []>} : vector<16x128xf32>, vector<128x128xf32>, vector<16x128xf32> -> vector<16x128xf32>
    %42 = arith.addf %37, %41 : vector<16x128xf32>
    %c2_46 = arith.constant 2 : index
    %c0_47 = arith.constant 0 : index
    %43 = vector.load %arg10[%c2_46, %c0_47] : memref<18x128xf32, #tpu.memory_space<vmem>>, vector<16x128xf32>
    %c2_48 = arith.constant 2 : index
    %c0_49 = arith.constant 0 : index
    %c0_50 = arith.constant 0 : index
    %44 = vector.load %arg5[%c2_48, %c0_49, %c0_50] : memref<3x128x128xf32, #tpu.memory_space<vmem>>, vector<1x128x128xf32>
    %45 = vector.shape_cast %44 : vector<1x128x128xf32> to vector<128x128xf32>
    %cst_51 = arith.constant dense<0.000000e+00> : vector<16x128xf32>
    %46 = tpu.matmul %43, %45, %cst_51 {dimension_numbers = #tpu.dot_dimension_numbers<[1], [0], [0], [1], [0, 0, 1, 1], [], []>} : vector<16x128xf32>, vector<128x128xf32>, vector<16x128xf32> -> vector<16x128xf32>
    %47 = arith.addf %42, %46 : vector<16x128xf32>
    %c0_52 = arith.constant 0 : index
    %c0_53 = arith.constant 0 : index
    %48 = vector.load %arg6[%c0_52, %c0_53] : memref<1x128xf32, #tpu.memory_space<vmem>>, vector<1x128xf32>
    %49 = vector.broadcast %48 : vector<1x128xf32> to vector<16x128xf32>
    %50 = arith.mulf %47, %49 : vector<16x128xf32>
    %c0_54 = arith.constant 0 : index
    %c0_55 = arith.constant 0 : index
    %51 = vector.load %arg7[%c0_54, %c0_55] : memref<1x128xf32, #tpu.memory_space<vmem>>, vector<1x128xf32>
    %52 = vector.broadcast %51 : vector<1x128xf32> to vector<16x128xf32>
    %53 = arith.addf %50, %52 : vector<16x128xf32>
    %cst_56 = arith.constant 0.000000e+00 : f32
    %54 = vector.broadcast %cst_56 : f32 to vector<16x128xf32>
    %55 = arith.maximumf %53, %54 : vector<16x128xf32>
    %c0_57 = arith.constant 0 : index
    %c0_58 = arith.constant 0 : index
    %c0_59 = arith.constant 0 : index
    %56 = vector.load %arg8[%c0_57, %c0_58, %c0_59] : memref<1x16x128xf32, #tpu.memory_space<vmem>>, vector<1x16x128xf32>
    %57 = vector.shape_cast %56 : vector<1x16x128xf32> to vector<16x128xf32>
    %58 = vector.shape_cast %55 : vector<16x128xf32> to vector<1x16x128xf32>
    tpu.vector_store %arg8[%c0_57, %c0_58, %c0_59], %58 {strides = array<i32>} : memref<1x16x128xf32, #tpu.memory_space<vmem>>, vector<1x16x128xf32>,
    return
  }
  func.func @transform_0(%arg0: i32) -> (i32, i32, i32) {
    %c0_i32 = arith.constant 0 : i32
    %c0_i32_0 = arith.constant 0 : i32
    %c0_i32_1 = arith.constant 0 : i32
    return %arg0, %c0_i32, %c0_i32_0 : i32, i32, i32
  }
  func.func @transform_1(%arg0: i32) -> (i32, i32, i32) {
    %c0_i32 = arith.constant 0 : i32
    %c0_i32_0 = arith.constant 0 : i32
    %c0_i32_1 = arith.constant 0 : i32
    %c0_i32_2 = arith.constant 0 : i32
    return %c0_i32, %c0_i32_0, %c0_i32_1 : i32, i32, i32
  }
  func.func @transform_2(%arg0: i32) -> (i32, i32) {
    %c0_i32 = arith.constant 0 : i32
    %c0_i32_0 = arith.constant 0 : i32
    %c0_i32_1 = arith.constant 0 : i32
    return %c0_i32, %c0_i32_0 : i32, i32
  }
  func.func @transform_3(%arg0: i32) -> (i32, i32) {
    %c0_i32 = arith.constant 0 : i32
    %c0_i32_0 = arith.constant 0 : i32
    %c0_i32_1 = arith.constant 0 : i32
    return %c0_i32, %c0_i32_0 : i32, i32
  }
  func.func @transform_4(%arg0: i32) -> (i32, i32, i32) {
    %c0_i32 = arith.constant 0 : i32
    %c0_i32_0 = arith.constant 0 : i32
    %c0_i32_1 = arith.constant 0 : i32
    %c0_i32_2 = arith.constant 0 : i32
    return %c0_i32, %c0_i32_0, %c0_i32_1 : i32, i32, i32
  }
  func.func @transform_5(%arg0: i32) -> (i32, i32) {
    %c0_i32 = arith.constant 0 : i32
    %c0_i32_0 = arith.constant 0 : i32
    %c0_i32_1 = arith.constant 0 : i32
    return %c0_i32, %c0_i32_0 : i32, i32
  }
  func.func @transform_6(%arg0: i32) -> (i32, i32) {
    %c0_i32 = arith.constant 0 : i32
    %c0_i32_0 = arith.constant 0 : i32
    %c0_i32_1 = arith.constant 0 : i32
    return %c0_i32, %c0_i32_0 : i32, i32
  }
  func.func @transform_7(%arg0: i32) -> (i32, i32, i32) {
    %c0_i32 = arith.constant 0 : i32
    %c0_i32_0 = arith.constant 0 : i32
    %c0_i32_1 = arith.constant 0 : i32
    return %arg0, %c0_i32, %c0_i32_0 : i32, i32, i32
  }
}

</mosaic_0001>

<bundles_post_ra>
// kernel: tile.23
= control target key start
LH: loop header
LB: loop body
LE: loop exit
PB: predicated region body
PF: predicated region fallthrough
CT: control target
= control target key end

     0   :  { %s28_s0 = inlined_call_operand.vmem [shape: f32[8], index: 0, kind: input, shape index: {}]   ;;  %s29_s1 = inlined_call_operand.vmem [shape: f32[16,8], index: 1, kind: output, shape index: {}]  }
   0x1   :  { %v4_v0 = vld [vmem:[%s28_s0] ss:$0 sm:$0xff] }
   0x2   :  { %5 = vst [vmem:[%s29_s1] sm:$0xff] %v4_v0  ;;  %8 = vst [vmem:[%s29_s1 + $0x8] sm:$0xff] %v4_v0 }

// kernel: tile.24
= control target key start
LH: loop header
LB: loop body
LE: loop exit
PB: predicated region body
PF: predicated region fallthrough
CT: control target
= control target key end

     0   :  { %s131_s10 = smov 120   ;;  %s132_s11 = smov 104   ;;  %vm3_vm0 = vcmask 64512   ;;  %vm9_vm1 = vcmask 1048512   ;;  %vm15_vm2 = vcmask 982912   ;;  %vm21_vm3 = vcmask 917312   ;;  %s207_s0 = inlined_call_operand.vmem [shape: f32[16,8], index: 0, kind: input, shape index: {}]   ;;  %s208_s1 = inlined_call_operand.vmem [shape: f32[1,128], index: 1, kind: output, shape index: {}]  }
   0x1   :  { %v101_v0 = vld [vmem:[%s207_s0 + $0xf] sm:$0x1]   ;;  %v103_v1 = vld [vmem:[%s207_s0 + $0xd] sm:$0x1]   ;;  %v102_v2 = vld [vmem:[%s207_s0 + $0xe] sm:$0x1]  }
   0x2   :  { %7 = vrot.lane.b32.xlu0 %v101_v0, %s131_s10  ;;  %19 = vrot.lane.b32.xlu1 %v103_v1, %s132_s11  ;;  %v104_v3 = vld [vmem:[%s207_s0 + $0xc] sm:$0x1]   ;;  %s133_s16 = smov 112   ;;  %s134_s17 = smov 96   ;;  %v105_v4 = vld [vmem:[%s207_s0 + $0xb] sm:$0x1]  }
   0x3   :  { %v106_v5 = vld [vmem:[%s207_s0 + $0xa] sm:$0x1]   ;;  %v2_v6 = vld [vmem:[%s207_s0] sm:$0x1]   ;;  %s135_s24 = smov 88   ;;  %s136_s25 = smov 80  }
   0x4   :  { %4 = vst.msk [vmem:[#allocation0] sm:$0x1] %vm3_vm0, %v2_v6   ;;  %v107_v7 = vld [vmem:[%s207_s0 + $0x9] sm:$0x1]   ;;  %v108_v8 = vld [vmem:[%s207_s0 + $0x8] sm:$0x1]  }
   0x5   :  { %s137_s30 = smov 72   ;;  %s138_s2 = smov 64   ;;  %v109_v9 = vld [vmem:[%s207_s0 + $0x7] sm:$0x1]   ;;  %v110_v10 = vld [vmem:[%s207_s0 + $0x6] sm:$0x1]  }
   0x6   :  { %13 = vrot.lane.b32.xlu0 %v102_v2, %s133_s16  ;;  %25 = vrot.lane.b32.xlu1 %v104_v3, %s134_s17  ;;  %s139_s7 = smov 56   ;;  %s140_s8 = smov 48   ;;  %v111_v11 = vld [vmem:[%s207_s0 + $0x5] sm:$0x1]   ;;  %v112_v12 = vld [vmem:[%s207_s0 + $0x4] sm:$0x1]  }
   0x7   :  { %s141_s13 = smov 40   ;;  %s142_s14 = smov 32   ;;  %v113_v13 = vld [vmem:[%s207_s0 + $0x3] sm:$0x1]   ;;  %v114_v14 = vld [vmem:[%s207_s0 + $0x2] sm:$0x1]  }
   0x8   :  { %s143_s19 = smov 24   ;;  %s144_s20 = smov 16   ;;  %v115_v15 = vld [vmem:[%s207_s0 + $0x1] sm:$0x1]   ;;  %vm27_vm4 = vcmask 851712   ;;  %vm33_vm5 = vcmask 786112  }
   0x9   :  { %s145_s0 = smov 8   ;;  %vm39_vm6 = vcmask 720512   ;;  %vm45_vm7 = vcmask 654912   ;;  %vm51_vm8 = vcmask 589312   ;;  %vm57_vm9 = vcmask 523712  }
   0xa   :  { %31 = vrot.lane.b32.xlu0 %v105_v4, %s135_s24  ;;  %37 = vrot.lane.b32.xlu1 %v106_v5, %s136_s25  ;;  %vm63_vm10 = vcmask 458112   ;;  %vm69_vm11 = vcmask 392512   ;;  %vm75_vm12 = vcmask 326912   ;;  %vm81_vm13 = vcmask 261312  }
   0xb   :  { %vm87_vm14 = vcmask 195712   ;;  %vm93_vm15 = vcmask 130112  }
   0xe   :  { %43 = vrot.lane.b32.xlu0 %v107_v7, %s137_s30  ;;  %49 = vrot.lane.b32.xlu1 %v108_v8, %s138_s2 }
  0x12   :  { %55 = vrot.lane.b32.xlu0 %v109_v9, %s139_s7  ;;  %61 = vrot.lane.b32.xlu1 %v110_v10, %s140_s8 }
  0x16   :  { %67 = vrot.lane.b32.xlu0 %v111_v11, %s141_s13  ;;  %73 = vrot.lane.b32.xlu1 %v112_v12, %s142_s14 }
  0x1a   :  { %79 = vrot.lane.b32.xlu0 %v113_v13, %s143_s19  ;;  %85 = vrot.lane.b32.xlu1 %v114_v14, %s144_s20 }
  0x1e   :  { %91 = vrot.lane.b32.xlu0 %v115_v15, %s145_s0 }
  0x74   :  { %v8_v16 = vpop.permute.xlu0 %7   ;;  %v20_v17 = vpop.permute.xlu1 %19  }
  0x75   :  { %10 = vst.msk [vmem:[#allocation0] sm:$0x1] %vm9_vm1, %v8_v16  }
  0x78   :  { %v14_v18 = vpop.permute.xlu0 %13   ;;  %v26_v19 = vpop.permute.xlu1 %25  }
  0x79   :  { %16 = vst.msk [vmem:[#allocation0] sm:$0x1] %vm15_vm2, %v14_v18  }
  0x7a   :  { %22 = vst.msk [vmem:[#allocation0] sm:$0x1] %vm21_vm3, %v20_v17  }
  0x7b   :  { %28 = vst.msk [vmem:[#allocation0] sm:$0x1] %vm27_vm4, %v26_v19  }
  0x7c   :  { %v32_v20 = vpop.permute.xlu0 %31   ;;  %v38_v21 = vpop.permute.xlu1 %37  }
  0x7d   :  { %34 = vst.msk [vmem:[#allocation0] sm:$0x1] %vm33_vm5, %v32_v20  }
  0x7e   :  { %40 = vst.msk [vmem:[#allocation0] sm:$0x1] %vm39_vm6, %v38_v21  }
  0x80   :  { %v44_v22 = vpop.permute.xlu0 %43   ;;  %v50_v23 = vpop.permute.xlu1 %49  }
  0x81   :  { %46 = vst.msk [vmem:[#allocation0] sm:$0x1] %vm45_vm7, %v44_v22  }
  0x82   :  { %52 = vst.msk [vmem:[#allocation0] sm:$0x1] %vm51_vm8, %v50_v23  }
  0x84   :  { %v56_v24 = vpop.permute.xlu0 %55   ;;  %v62_v25 = vpop.permute.xlu1 %61  }
  0x85   :  { %58 = vst.msk [vmem:[#allocation0] sm:$0x1] %vm57_vm9, %v56_v24  }
  0x86   :  { %64 = vst.msk [vmem:[#allocation0] sm:$0x1] %vm63_vm10, %v62_v25  }
  0x88   :  { %v68_v26 = vpop.permute.xlu0 %67   ;;  %v74_v27 = vpop.permute.xlu1 %73  }
  0x89   :  { %70 = vst.msk [vmem:[#allocation0] sm:$0x1] %vm69_vm11, %v68_v26  }
  0x8a   :  { %76 = vst.msk [vmem:[#allocation0] sm:$0x1] %vm75_vm12, %v74_v27  }
  0x8c   :  { %v80_v28 = vpop.permute.xlu0 %79   ;;  %v86_v29 = vpop.permute.xlu1 %85  }
  0x8d   :  { %82 = vst.msk [vmem:[#allocation0] sm:$0x1] %vm81_vm13, %v80_v28  }
  0x8e   :  { %88 = vst.msk [vmem:[#allocation0] sm:$0x1] %vm87_vm14, %v86_v29  }
  0x90   :  { %v92_v30 = vpop.permute.xlu0 %91  }
  0x91   :  { %94 = vst.msk [vmem:[#allocation0] sm:$0x1] %vm93_vm15, %v92_v30  }
  0x98   :  { %v98_v31 = vld [vmem:[#allocation0] sm:$0x1] }
  0x99   :  { %100 = vst [vmem:[%s208_s1] sm:$0x1] %v98_v31 }

// kernel: unet_conv2_forward.1
= control target key start
LH: loop header
LB: loop body
LE: loop exit
PB: predicated region body
PF: predicated region fallthrough
CT: control target
= control target key end

     0   :  { %s1477_s24 = smov 0   ;;  %s1745_s0 = inlined_call_operand.vmem [shape: f32[2,16,64], index: 0, kind: input, shape index: {}]   ;;  %s1746_s1 = inlined_call_operand.vmem [shape: f32[3,64,128], index: 1, kind: input, shape index: {}]   ;;  %s1747_s2 = inlined_call_operand.vmem [shape: f32[1,128], index: 2, kind: input, shape index: {}]   ;;  %s1748_s3 = inlined_call_operand.vmem [shape: f32[1,128], index: 3, kind: input, shape index: {}]   ;;  %s1749_s4 = inlined_call_operand.vmem [shape: f32[3,128,128], index: 4, kind: input, shape index: {}]   ;;  %s1750_s5 = inlined_call_operand.vmem [shape: f32[1,128], index: 5, kind: input, shape index: {}]   ;;  %s1751_s6 = inlined_call_operand.vmem [shape: f32[1,128], index: 6, kind: input, shape index: {}]   ;;  %s1752_s7 = inlined_call_operand.vmem [shape: f32[2,16,128], index: 7, kind: output, shape index: {}]  }
   0x1 LB: > { %s950_s25 = sadd.s32 4294967295, %s1434_s24   ;;  %p954_p0 = scmp.ge.s32.totalorder %s1434_s24, 1  ;;  %s1434_s24 = sphi %s1477_s24, %s17_s24  }
   0x2   : > { %p237_p1 = scmp.lt.s32.totalorder %s1434_s24, 3 }
   0x4   : > { %p238_p2 = pnand %p954_p0, %p237_p1 }
   0x5   : > { %v959_v0 = vld [vmem:[%s1746_s1 + $0x40] sm:$0xff] (!%p238_p2)  ;;  %v960_v1 = vld [vmem:[%s1746_s1 + $0x48] sm:$0xff] (!%p238_p2)  ;;  %v961_v2 = vld [vmem:[%s1746_s1 + $0x50] sm:$0xff] (!%p238_p2)  ;;  %p1494_p3 = scmp.lt.s32.totalorder (!%p238_p2), %s950_s25, 1  ;;  %vm279_vm0 = vcmask (!%p238_p2), 523264   ;;  %v1436_v5 = vmov (!%p238_p2), 0.0  }
   0x6   : > { %241 = sbr.rel (%p238_p2) target bundleno = 540 (0x21c), region = 48  ;;  %v1267_v3 = vpack.c.bf16 (!%p238_p2), %v960_v1, %v959_v0  ;;  %v962_v4 = vld [vmem:[%s1746_s1 + $0x58] sm:$0xff] (!%p238_p2)  ;;  %280 = vst.msk [vmem:[#allocation2] sm:$0xff] (!%p238_p2), %vm279_vm0, %v1436_v5  ;;  %281 = vst.msk [vmem:[#allocation2 + $0x8] sm:$0xff] (!%p238_p2), %vm279_vm0, %v1436_v5  ;;  %vm282_vm1 = vcmask (!%p238_p2), 517120   ;;  %v963_v7 = vld [vmem:[%s1746_s1 + $0x60] sm:$0xff] (!%p238_p2) }
   0x7   : > { %585 = vst [vmem:[#allocation3] sm:$0xff] (!%p238_p2), %v1436_v5  ;;  %586 = vst [vmem:[#allocation3 + $0x8] sm:$0xff] (!%p238_p2), %v1436_v5  ;;  %v1271_v6 = vpack.c.bf16 (!%p238_p2), %v962_v4, %v961_v2  ;;  %v964_v8 = vld [vmem:[%s1746_s1 + $0x68] sm:$0xff] (!%p238_p2)  ;;  %v965_v10 = vld [vmem:[%s1746_s1 + $0x70] sm:$0xff] (!%p238_p2) }
   0x8   : > { %587 = vst [vmem:[#allocation3 + $0x10] sm:$0x3] (!%p238_p2), %v1436_v5  ;;  %283 = vst.msk [vmem:[#allocation2 + $0x10] sm:$0x3] (!%p238_p2), %vm282_vm1, %v1436_v5  ;;  %1268 = vmatprep.subr.bf16.mxu0 (!%p238_p2), %v1267_v3  ;;  %v1275_v9 = vpack.c.bf16 (!%p238_p2), %v964_v8, %v963_v7  ;;  %v966_v11 = vld [vmem:[%s1746_s1 + $0x78] sm:$0xff] (!%p238_p2)  ;;  %v592_v14 = vld [vmem:[%s1749_s4] sm:$0xff] (!%p238_p2) }
   0x9   : > { %1270 = vmatpush3.bf16.msra.mxu0 (!%p238_p2), %v1267_v3  ;;  %v1279_v15 = vpack.c.bf16 (!%p238_p2), %v966_v11, %v965_v10  ;;  %v290_v16 = vld [vmem:[%s1746_s1] sm:$0xff] (!%p238_p2)  ;;  %v593_v17 = vld [vmem:[%s1749_s4 + $0x8] sm:$0xff] (!%p238_p2)  ;;  %v594_v20 = vld [vmem:[%s1749_s4 + $0x10] sm:$0xff] (!%p238_p2) }
   0xa   : > { %1272 = vmatprep.subr.bf16.mxu0 (!%p238_p2), %v1271_v6  ;;  %v291_v18 = vld [vmem:[%s1746_s1 + $0x8] sm:$0xff] (!%p238_p2)  ;;  %v1347_v19 = vpack.c.bf16 (!%p238_p2), %v593_v17, %v592_v14  ;;  %v595_v21 = vld [vmem:[%s1749_s4 + $0x18] sm:$0xff] (!%p238_p2)  ;;  %v596_v23 = vld [vmem:[%s1749_s4 + $0x20] sm:$0xff] (!%p238_p2) }
   0xb   : > { %v1351_v22 = vpack.c.bf16 (!%p238_p2), %v595_v21, %v594_v20  ;;  %v597_v24 = vld [vmem:[%s1749_s4 + $0x28] sm:$0xff] (!%p238_p2)  ;;  %v1283_v25 = vpack.c.bf16 (!%p238_p2), %v291_v18, %v290_v16  ;;  %v292_v27 = vld [vmem:[%s1746_s1 + $0x10] sm:$0xff] (!%p238_p2)  ;;  %v293_v28 = vld [vmem:[%s1746_s1 + $0x18] sm:$0xff] (!%p238_p2) }
   0xc   : > { %1348 = vmatprep.subr.bf16.mxu1 (!%p238_p2), %v1347_v19  ;;  %v1355_v29 = vpack.c.bf16 (!%p238_p2), %v597_v24, %v596_v23  ;;  %v598_v30 = vld [vmem:[%s1749_s4 + $0x30] sm:$0xff] (!%p238_p2)  ;;  %v599_v31 = vld [vmem:[%s1749_s4 + $0x38] sm:$0xff] (!%p238_p2)  ;;  %v1287_v33 = vpack.c.bf16 (!%p238_p2), %v293_v28, %v292_v27  ;;  %v294_v35 = vld [vmem:[%s1746_s1 + $0x20] sm:$0xff] (!%p238_p2) }
   0xd   : > { %s1755_s25 = smov (!%p1494_p3, %s950_s25), 1  ;;  %1274 = vmatpush3.bf16.msra.mxu0 %v1271_v6  ;;  %1350 = vmatpush3.bf16.msra.mxu1 %v1347_v19  ;;  %v295_v36 = vld [vmem:[%s1746_s1 + $0x28] sm:$0xff]  ;;  %v1359_v37 = vpack.c.bf16 %v599_v31, %v598_v30  ;;  %v296_v39 = vld [vmem:[%s1746_s1 + $0x30] sm:$0xff]  ;;  %v297_v40 = vld [vmem:[%s1746_s1 + $0x38] sm:$0xff] }
   0xe   : > { %s1019_s16 = sshll.u32 %s1755_s25, 4  ;;  %1276 = vmatprep.subr.bf16.mxu0 %v1275_v9  ;;  %1352 = vmatprep.subr.bf16.mxu1 %v1351_v22  ;;  %v1291_v38 = vpack.c.bf16 %v295_v36, %v294_v35  ;;  %v1295_v41 = vpack.c.bf16 %v297_v40, %v296_v39  ;;  %v971_v42 = vld [vmem:[%s1746_s1 + $0x80] sm:$0xff]  ;;  %v972_v43 = vld [vmem:[%s1746_s1 + $0x88] sm:$0xff]  ;;  %v973_v45 = vld [vmem:[%s1746_s1 + $0x90] sm:$0xff] }
   0xf   : > { %s273_s21 = scalar_lea.vmem %s1745_s0, %s1019_s16  ;;  %v1299_v44 = vpack.c.bf16 %v972_v43, %v971_v42  ;;  %v974_v46 = vld [vmem:[%s1746_s1 + $0x98] sm:$0xff]  ;;  %v975_v50 = vld [vmem:[%s1746_s1 + $0xa0] sm:$0xff]  ;;  %v976_v51 = vld [vmem:[%s1746_s1 + $0xa8] sm:$0xff]  ;;  %s278_s22 = scalar_lea.vmem %s1752_s7, %s1019_s16 }
  0x10   : > { %v284_v12 = vld [vmem:[%s273_s21] sm:$0xff]  ;;  %v285_v13 = vld [vmem:[%s273_s21 + $0x8] sm:$0xff]  ;;  %v1303_v48 = vpack.c.bf16 %v974_v46, %v973_v45  ;;  %v1307_v52 = vpack.c.bf16 %v976_v51, %v975_v50  ;;  %v977_v53 = vld [vmem:[%s1746_s1 + $0xb0] sm:$0xff] }
  0x11   : > { %286 = vst.msk [vmem:[#allocation2 + $0x1] sm:$0xff] %vm279_vm0, %v284_v12  ;;  %287 = vst.msk [vmem:[#allocation2 + $0x9] sm:$0xff] %vm279_vm0, %v285_v13  ;;  %1278 = vmatpush3.bf16.msra.mxu0 %v1275_v9  ;;  %1354 = vmatpush3.bf16.msra.mxu1 %v1351_v22  ;;  %v978_v54 = vld [vmem:[%s1746_s1 + $0xb8] sm:$0xff]  ;;  %v983_v56 = vld [vmem:[%s1749_s4 + $0x80] sm:$0xff] }
  0x12   : > { %1280 = vmatprep.subr.bf16.mxu0 %v1279_v15  ;;  %1356 = vmatprep.subr.bf16.mxu1 %v1355_v29  ;;  %v1311_v55 = vpack.c.bf16 %v978_v54, %v977_v53  ;;  %v984_v57 = vld [vmem:[%s1749_s4 + $0x88] sm:$0xff]  ;;  %v985_v59 = vld [vmem:[%s1749_s4 + $0x90] sm:$0xff]  ;;  %v986_v60 = vld [vmem:[%s1749_s4 + $0x98] sm:$0xff] }
  0x13   : > { %v1315_v58 = vpack.c.bf16 %v984_v57, %v983_v56  ;;  %v1319_v62 = vpack.c.bf16 %v986_v60, %v985_v59  ;;  %v987_v63 = vld [vmem:[%s1749_s4 + $0xa0] sm:$0xff]  ;;  %v988_v0 = vld [vmem:[%s1749_s4 + $0xa8] sm:$0xff]  ;;  %v989_v2 = vld [vmem:[%s1749_s4 + $0xb0] sm:$0xff] }
  0x14   : > { %v1323_v1 = vpack.c.bf16 %v988_v0, %v987_v63  ;;  %v990_v3 = vld [vmem:[%s1749_s4 + $0xb8] sm:$0xff]  ;;  %v991_v5 = vld [vmem:[%s1749_s4 + $0xc0] sm:$0xff]  ;;  %v992_v6 = vld [vmem:[%s1749_s4 + $0xc8] sm:$0xff] }
  0x15   : > { %1282 = vmatpush3.bf16.msra.mxu0 %v1279_v15  ;;  %1358 = vmatpush3.bf16.msra.mxu1 %v1355_v29  ;;  %v1327_v4 = vpack.c.bf16 %v990_v3, %v989_v2  ;;  %v1331_v7 = vpack.c.bf16 %v992_v6, %v991_v5  ;;  %v993_v8 = vld [vmem:[%s1749_s4 + $0xd0] sm:$0xff]  ;;  %v994_v9 = vld [vmem:[%s1749_s4 + $0xd8] sm:$0xff]  ;;  %v600_v11 = vld [vmem:[%s1749_s4 + $0x40] sm:$0xff] }
  0x16   : > { %1284 = vmatprep.subr.bf16.mxu0 %v1283_v25  ;;  %1360 = vmatprep.subr.bf16.mxu1 %v1359_v37  ;;  %v1335_v10 = vpack.c.bf16 %v994_v9, %v993_v8  ;;  %v601_v12 = vld [vmem:[%s1749_s4 + $0x48] sm:$0xff]  ;;  %v995_v14 = vld [vmem:[%s1749_s4 + $0xe0] sm:$0xff]  ;;  %v602_v17 = vld [vmem:[%s1749_s4 + $0x50] sm:$0xff] }
  0x17   : > { %v1363_v13 = vpack.c.bf16 %v601_v12, %v600_v11  ;;  %v996_v15 = vld [vmem:[%s1749_s4 + $0xe8] sm:$0xff]  ;;  %v603_v18 = vld [vmem:[%s1749_s4 + $0x58] sm:$0xff]  ;;  %v997_v20 = vld [vmem:[%s1749_s4 + $0xf0] sm:$0xff] }
  0x18   : > { %v298_v26 = vld [vmem:[#allocation2 + $0x1] sm:$0xff]  ;;  %v299_v32 = vld [vmem:[#allocation2 + $0x9] sm:$0xff]  ;;  %v1339_v16 = vpack.c.bf16 %v996_v15, %v995_v14  ;;  %v1367_v19 = vpack.c.bf16 %v603_v18, %v602_v17  ;;  %v998_v21 = vld [vmem:[%s1749_s4 + $0xf8] sm:$0xff] }
  0x19   : > { %1121 = vmatprep.mubr.msk.f32.mxu0 %vm279_vm0, %v298_v26  ;;  %v288_v34 = vld [vmem:[#allocation2] sm:$0xff]  ;;  %1362 = vmatpush3.bf16.msra.mxu1 %v1359_v37  ;;  %v289_v47 = vld [vmem:[#allocation2 + $0x8] sm:$0xff]  ;;  %v1343_v22 = vpack.c.bf16 %v998_v21, %v997_v20  ;;  %v606_v26 = vld [vmem:[%s1749_s4 + $0x70] sm:$0xff] }
  0x1a   : > { %1122 = vmatmul.mubr.msk.f32.vlgmr.msra.gmra.mrb[0].mxu0 %vm279_vm0, %v299_v32  ;;  %v471_v49 = vld [vmem:[#allocation2 + $0x2] sm:$0xff]  ;;  %v472_v61 = vld [vmem:[#allocation2 + $0xa] sm:$0xff]  ;;  %1364 = vmatprep.subr.bf16.mxu1 %v1363_v13  ;;  %v607_v27 = vld [vmem:[%s1749_s4 + $0x78] sm:$0xff] }
  0x1b   : > { %1286 = vmatpush3.bf16.msra.mxu0 %v1283_v25  ;;  %1140 = vmatprep.mubr.msk.f32.mxu0 %vm279_vm0, %v288_v34  ;;  %v604_v23 = vld [vmem:[%s1749_s4 + $0x60] sm:$0xff]  ;;  %v605_v24 = vld [vmem:[%s1749_s4 + $0x68] sm:$0xff]  ;;  %v1375_v28 = vpack.c.bf16 %v607_v27, %v606_v26  ;;  %v1001_v42 = vld [vmem:[%s1749_s4 + $0x110] sm:$0xff] }
  0x1c   : > { %1288 = vmatprep.subr.bf16.mxu0 %v1287_v33  ;;  %v1371_v25 = vpack.c.bf16 %v605_v24, %v604_v23  ;;  %v999_v29 = vld [vmem:[%s1749_s4 + $0x100] sm:$0xff]  ;;  %v1000_v30 = vld [vmem:[%s1749_s4 + $0x108] sm:$0xff]  ;;  %v1002_v43 = vld [vmem:[%s1749_s4 + $0x118] sm:$0xff] }
  0x1d   : > { %1366 = vmatpush3.bf16.msra.mxu1 %v1363_v13  ;;  %v1379_v31 = vpack.c.bf16 %v1000_v30, %v999_v29  ;;  %v981_v32 = vld [vmem:[%s1747_s2] ss:$0 sm:$0xff]  ;;  %v1383_v46 = vpack.c.bf16 %v1002_v43, %v1001_v42  ;;  %v1005_v51 = vld [vmem:[%s1749_s4 + $0x130] sm:$0xff]  ;;  %v1014_v0 = vld [vmem:[%s1749_s4 + $0x178] sm:$0xff] }
  0x1e   : > { %1368 = vmatprep.subr.bf16.mxu1 %v1367_v19  ;;  %v982_v34 = vld [vmem:[%s1748_s3] ss:$0 sm:$0xff]  ;;  %v1009_v57 = vld [vmem:[%s1749_s4 + $0x150] sm:$0xff] }
  0x1f   : > { %1290 = vmatpush3.bf16.msra.mxu0 %v1287_v33  ;;  %v1007_v54 = vld [vmem:[%s1749_s4 + $0x140] sm:$0xff]  ;;  %v1013_v63 = vld [vmem:[%s1749_s4 + $0x170] sm:$0xff] }
  0x20   : > { %1292 = vmatprep.subr.bf16.mxu0 %v1291_v38  ;;  %v1011_v60 = vld [vmem:[%s1749_s4 + $0x160] sm:$0xff] }
  0x21   : > { %1370 = vmatpush3.bf16.msra.mxu1 %v1367_v19  ;;  %v1015_v6 = vld [vmem:[%s1750_s5] ss:$0 sm:$0xff] }
  0x22   : > { %1372 = vmatprep.subr.bf16.mxu1 %v1371_v25  ;;  %v1016_v9 = vld [vmem:[%s1751_s6] ss:$0 sm:$0xff] }
  0x23   : > { %1294 = vmatpush3.bf16.msra.mxu0 %v1291_v38 }
  0x24   : > { %1296 = vmatprep.subr.bf16.mxu0 %v1295_v41 }
  0x25   : > { %1374 = vmatpush3.bf16.msra.mxu1 %v1371_v25 }
  0x26   : > { %1376 = vmatprep.subr.bf16.mxu1 %v1375_v28 }
  0x27   : > { %1298 = vmatpush3.bf16.msra.mxu0 %v1295_v41 }
  0x28   : > { %1300 = vmatprep.subr.bf16.mxu0 %v1299_v44 }
  0x29   : > { %1378 = vmatpush3.bf16.msra.mxu1 %v1375_v28 }
  0x2a   : > { %1141 = vmatmul.mubr.msk.f32.vlgmr.msra.gmra.mrb[0].mxu0 %vm279_vm0, %v289_v47  ;;  %1380 = vmatprep.subr.bf16.mxu1 %v1379_v31  ;;  %v1003_v47 = vld [vmem:[%s1749_s4 + $0x120] sm:$0xff] }
  0x2b   : > { %1302 = vmatpush3.bf16.msra.mxu0 %v1299_v44  ;;  %1159 = vmatprep.mubr.msk.f32.mxu0 %vm279_vm0, %v471_v49 }
  0x2c   : > { %1304 = vmatprep.subr.bf16.mxu0 %v1303_v48 }
  0x2f   : > { %1306 = vmatpush3.bf16.msra.mxu0 %v1303_v48  ;;  %v1004_v48 = vld [vmem:[%s1749_s4 + $0x128] sm:$0xff] }
  0x30   : > { %1308 = vmatprep.subr.bf16.mxu0 %v1307_v52  ;;  %v1387_v50 = vpack.c.bf16 %v1004_v48, %v1003_v47 }
  0x33   : > { %1310 = vmatpush3.bf16.msra.mxu0 %v1307_v52  ;;  %v1006_v52 = vld [vmem:[%s1749_s4 + $0x138] sm:$0xff] }
  0x34   : > { %1312 = vmatprep.subr.bf16.mxu0 %v1311_v55  ;;  %v1391_v53 = vpack.c.bf16 %v1006_v52, %v1005_v51 }
  0x37   : > { %1314 = vmatpush3.bf16.msra.mxu0 %v1311_v55  ;;  %v1008_v55 = vld [vmem:[%s1749_s4 + $0x148] sm:$0xff] }
  0x38   : > { %1316 = vmatprep.subr.bf16.mxu0 %v1315_v58  ;;  %v1395_v56 = vpack.c.bf16 %v1008_v55, %v1007_v54 }
  0x3a   : > { %1160 = vmatmul.mubr.msk.f32.vlgmr.msra.gmra.mrb[0].mxu0 %vm279_vm0, %v472_v61  ;;  %v1012_v61 = vld [vmem:[%s1749_s4 + $0x168] sm:$0xff] }
  0x3b   : > { %1318 = vmatpush3.bf16.msra.mxu0 %v1315_v58  ;;  %v1010_v58 = vld [vmem:[%s1749_s4 + $0x158] sm:$0xff] }
  0x3c   : > { %1320 = vmatprep.subr.bf16.mxu0 %v1319_v62  ;;  %v1399_v59 = vpack.c.bf16 %v1010_v58, %v1009_v57 }
  0x3f   : > { %1322 = vmatpush3.bf16.msra.mxu0 %v1319_v62  ;;  %v1403_v62 = vpack.c.bf16 %v1012_v61, %v1011_v60 }
  0x40   : > { %1324 = vmatprep.subr.bf16.mxu0 %v1323_v1 }
  0x43   : > { %1326 = vmatpush3.bf16.msra.mxu0 %v1323_v1  ;;  %v1407_v1 = vpack.c.bf16 %v1014_v0, %v1013_v63 }
  0x44   : > { %1328 = vmatprep.subr.bf16.mxu0 %v1327_v4 }
  0x47   : > { %1330 = vmatpush3.bf16.msra.mxu0 %v1327_v4 }
  0x48   : > { %1332 = vmatprep.subr.bf16.mxu0 %v1331_v7 }
  0x4b   : > { %1334 = vmatpush3.bf16.msra.mxu0 %v1331_v7 }
  0x4c   : > { %1336 = vmatprep.subr.bf16.mxu0 %v1335_v10 }
  0x4f   : > { %1338 = vmatpush3.bf16.msra.mxu0 %v1335_v10 }
  0x50   : > { %1340 = vmatprep.subr.bf16.mxu0 %v1339_v16 }
  0x53   : > { %1342 = vmatpush3.bf16.msra.mxu0 %v1339_v16 }
  0x54   : > { %1344 = vmatprep.subr.bf16.mxu0 %v1343_v22 }
  0x57   : > { %1346 = vmatpush3.bf16.msra.mxu0 %v1343_v22 }
 0x10d   : > { %v1161_v33 = vpop.f32.mrb[0].mxu0 }
 0x10e   : > { %v573_v35 = vmul.f32 %v1161_v33, %v981_v32  ;;  %v554_v36 = vpop.f32.mrb[1].mxu0 }
 0x10f   : > { %v572_v37 = vmul.f32 %v981_v32, %v554_v36 }
 0x110   : > { %v582_v38 = vadd.f32 %v982_v34, %v573_v35 }
 0x111   : > { %v581_v39 = vadd.f32 %v982_v34, %v572_v37 }
 0x112   : > { %v584_v40 = vmax.f32 %v582_v38, 0.0 }
 0x113   : > { %v583_v41 = vmax.f32 %v581_v39, 0.0 }
 0x114   : > { %589 = vst [vmem:[#allocation3 + $0x9] sm:$0xff] %v584_v40 }
 0x115   : > { %588 = vst [vmem:[#allocation3 + $0x1] sm:$0xff] %v583_v41  ;;  %1194 = vmatprep.mubr.f32.mxu0 %v583_v41 }
 0x116   : > { %1195 = vmatmul.mubr.f32.vlgmr.msra.gmra.mrb[2].mxu0 %v584_v40 }
 0x11b   : > { %v778_v2 = vld [vmem:[#allocation3 + $0xa] sm:$0xff] }
 0x11c   : > { %v590_v44 = vld [vmem:[#allocation3] sm:$0xff]  ;;  %v591_v45 = vld [vmem:[#allocation3 + $0x8] sm:$0xff] }
 0x11d   : > { %1229 = vmatprep.mubr.f32.mxu1 %v590_v44  ;;  %v777_v49 = vld [vmem:[#allocation3 + $0x2] sm:$0xff] }
 0x11e   : > { %1230 = vmatmul.mubr.f32.vlgmr.msra.gmra.mrb[0].mxu1 %v591_v45 }
 0x11f   : > { %1382 = vmatpush3.bf16.msra.mxu1 %v1379_v31  ;;  %1264 = vmatprep.mubr.f32.mxu1 %v777_v49 }
 0x120   : > { %1384 = vmatprep.subr.bf16.mxu1 %v1383_v46 }
 0x123   : > { %1386 = vmatpush3.bf16.msra.mxu1 %v1383_v46 }
 0x124   : > { %1388 = vmatprep.subr.bf16.mxu1 %v1387_v50 }
 0x127   : > { %1390 = vmatpush3.bf16.msra.mxu1 %v1387_v50 }
 0x128   : > { %1392 = vmatprep.subr.bf16.mxu1 %v1391_v53 }
 0x12b   : > { %1394 = vmatpush3.bf16.msra.mxu1 %v1391_v53 }
 0x12c   : > { %1396 = vmatprep.subr.bf16.mxu1 %v1395_v56 }
 0x12f   : > { %1398 = vmatpush3.bf16.msra.mxu1 %v1395_v56 }
 0x130   : > { %1400 = vmatprep.subr.bf16.mxu1 %v1399_v59 }
 0x133   : > { %1402 = vmatpush3.bf16.msra.mxu1 %v1399_v59 }
 0x134   : > { %1404 = vmatprep.subr.bf16.mxu1 %v1403_v62 }
 0x137   : > { %1406 = vmatpush3.bf16.msra.mxu1 %v1403_v62 }
 0x138   : > { %1408 = vmatprep.subr.bf16.mxu1 %v1407_v1 }
 0x13b   : > { %1410 = vmatpush3.bf16.msra.mxu1 %v1407_v1 }
 0x13e   : > { %1265 = vmatmul.mubr.f32.vlgmr.msra.gmra.mrb[0].mxu1 %v778_v2 }
 0x1e9   : > { %v1196_v3 = vpop.f32.mrb[2].mxu0 }
 0x1ea   : > { %v693_v4 = vpop.f32.mrb[3].mxu0 }
 0x211   : > { %v1266_v5 = vpop.f32.mrb[0].mxu1 }
 0x212   : > { %v1411_v7 = vadd.f32 %v1266_v5, %v1196_v3  ;;  %v862_v8 = vpop.f32.mrb[1].mxu1 }
 0x213   : > { %v1412_v10 = vadd.f32 %v862_v8, %v693_v4 }
 0x214   : > { %v881_v11 = vmul.f32 %v1411_v7, %v1015_v6 }
 0x215   : > { %v880_v12 = vmul.f32 %v1412_v10, %v1015_v6 }
 0x216   : > { %v890_v13 = vadd.f32 %v1016_v9, %v881_v11 }
 0x217   : > { %v889_v14 = vadd.f32 %v1016_v9, %v880_v12 }
 0x218   : > { %v892_v15 = vmax.f32 %v890_v13, 0.0 }
 0x219   : > { %v891_v16 = vmax.f32 %v889_v14, 0.0 }
 0x21a   : > { %894 = vst [vmem:[%s278_s22 + $0x8] sm:$0xff] %v892_v15 }
 0x21b   : > { %893 = vst [vmem:[%s278_s22] sm:$0xff] %v891_v16 }
 0x21c PF: > { %s17_s24 = sadd.s32 1, %s1434_s24  }
 0x21d   : > { %p14_p4 = scmp.ge.s32.totalorder %s17_s24, 4  }
 0x21f   :  { %16 = sbr.rel (!%p14_p4) target bundleno = 1 (0x1), region = 82 }

</bundles_post_ra>
